<compile_context>
chip_gen: v6e
topology: v6e:2x2x1
jax: 0.10.0
libtpu: 0.0.40
codegen_flags: <defaults>
</compile_context>

<pallas_src>
import functools

import jax
import jax.numpy as jnp
from jax.experimental import pallas as pl
from jax.experimental.pallas import tpu as pltpu


def vanilla_rnn_kernel(x_ref, whx_t_ref, whh_t_ref, bh_ref, wph_t_ref, bp_ref,
                       p_ref, *, seq_len, batch):
    """Full forward pass; all operands VMEM-resident, single invocation.

    x_ref:     (T*Bp, Dp)   time-major flattened, zero-padded input
    whx_t_ref: (Dp, Hp)     W_hx.T zero-padded (Dp mult of 8, Hp mult of 128)
    whh_t_ref: (Hp, Hp)     W_hh.T zero-padded
    bh_ref:    (1, Hp)      b_h zero-padded
    wph_t_ref: (Hp, Cp)     W_ph.T zero-padded (Cp mult of 128, lane-dense)
    bp_ref:    (1, Cp)      b_p zero-padded
    p_ref:     (Bp, Cp)     output logits (last timestep), padded
    """
    # Resident recurrent weight (one VMEM load, stays in vregs).
    whh = whh_t_ref[...]                                        # (Hp, Hp)

    # Hoisted, non-recurrent input projection: one MXU call with M = T*Bp,
    # bias folded in once.
    xw = (
        jnp.dot(x_ref[...], whx_t_ref[...],
                preferred_element_type=jnp.float32)
        + bh_ref[...]                                           # (1,Hp) broadcast
    )                                                           # (T*Bp, Hp)

    # Serial recurrence: h carried in registers, loop fully unrolled.
    # Each step: one (8,128)x(128,128) MXU tile + one full-vreg VPU add +
    # one EUP tanh. Static, vreg-aligned row slices of xw (batch padded to 8).
    num_hidden = whh.shape[1]
    h = jnp.zeros((batch, num_hidden), jnp.float32)
    for t in range(seq_len):
        xw_t = xw[t * batch:(t + 1) * batch, :]                 # (Bp, Hp)
        h = jnp.tanh(
            xw_t + jnp.dot(h, whh, preferred_element_type=jnp.float32))

    # Output head: p depends only on the final h (the PyTorch loop recomputes
    # p every step but only returns the last one). Lane-dense unmasked store.
    p_ref[...] = (
        jnp.dot(h, wph_t_ref[...], preferred_element_type=jnp.float32)
        + bp_ref[...]
    )


def _round_up(n, m):
    return ((n + m - 1) // m) * m


def prepare_rnn_params(W_hx, W_hh, b_h, W_ph, b_p):
    """One-time parameter prep: transpose + zero-pad to vreg-aligned shapes.

    Returns (whx_t, whh_t, bh, wph_t, bp) ready for vanilla_rnn_forward.
    """
    H = W_hh.shape[0]
    D = W_hx.shape[1]
    C = W_ph.shape[0]
    D_pad = max(8, _round_up(D, 8))          # sublane-aligned K for hoisted matmul
    H_pad = max(128, _round_up(H, 128))      # lane-dense hidden width
    C_pad = max(128, _round_up(C, 128))      # lane-dense output width

    whx_t = jnp.zeros((D_pad, H_pad), jnp.float32).at[:D, :H].set(
        jnp.transpose(W_hx).astype(jnp.float32))
    whh_t = jnp.zeros((H_pad, H_pad), jnp.float32).at[:H, :H].set(
        jnp.transpose(W_hh).astype(jnp.float32))
    bh = jnp.zeros((1, H_pad), jnp.float32).at[:, :H].set(
        jnp.reshape(b_h, (1, H)).astype(jnp.float32))
    wph_t = jnp.zeros((H_pad, C_pad), jnp.float32).at[:H, :C].set(
        jnp.transpose(W_ph).astype(jnp.float32))
    bp = jnp.zeros((1, C_pad), jnp.float32).at[:, :C].set(
        jnp.reshape(b_p, (1, C)).astype(jnp.float32))
    return whx_t, whh_t, bh, wph_t, bp


@functools.partial(jax.jit, static_argnames=("num_classes",))
def vanilla_rnn_forward(x, whx_t, whh_t, bh, wph_t, bp, *, num_classes):
    """x: (B, T, D) float32; pre-padded params from prepare_rnn_params.

    Returns logits (B, num_classes) float32 for the last timestep.
    """
    B, T, D = x.shape
    D_pad, H_pad = whx_t.shape
    C_pad = wph_t.shape[1]
    B_pad = max(8, _round_up(B, 8))          # sublane-aligned batch

    # Time-major, zero-padded flatten so each step's slice of the hoisted
    # projection is a contiguous whole-vreg row block. Only per-call x work.
    x_pad = jnp.zeros((T, B_pad, D_pad), jnp.float32)
    x_pad = x_pad.at[:, :B, :D].set(
        jnp.transpose(x, (1, 0, 2)).astype(jnp.float32))
    x_flat = x_pad.reshape(T * B_pad, D_pad)                    # (T*Bp, Dp)

    kernel = functools.partial(vanilla_rnn_kernel, seq_len=T, batch=B_pad)
    vmem = pl.BlockSpec(memory_space=pltpu.MemorySpace.VMEM)

    p_pad = pl.pallas_call(
        kernel,
        out_shape=jax.ShapeDtypeStruct((B_pad, C_pad), jnp.float32),
        in_specs=[vmem] * 6,
        out_specs=vmem,
    )(x_flat, whx_t, whh_t, bh, wph_t, bp)

    return p_pad[:B, :num_classes]


def reference_forward(x, W_hx, W_hh, b_h, W_ph, b_p):
    B, T, D = x.shape
    H = W_hh.shape[0]
    h = jnp.zeros((B, H), jnp.float32)
    p = None
    for i in range(T):
        h = jnp.tanh(x[:, i, :] @ W_hx.T + h @ W_hh.T + b_h)
        p = h @ W_ph.T + b_p
    return p


if __name__ == "__main__":
    # Module hyperparameters (small, consistent with the forward pass).
    batch_size = 2
    seq_length = 8
    input_dim = 4
    num_hidden = 32
    num_classes = 10

    key = jax.random.PRNGKey(0)
    k_x, k_whh, k_whx, k_wph = jax.random.split(key, 4)

    # Deterministic parameter init mirroring the PyTorch __init__:
    #   biases zero, weight matrices ~ N(0, 0.0001).
    b_h = jnp.zeros((1, num_hidden), jnp.float32)
    W_hh = 0.0001 * jax.random.normal(k_whh, (num_hidden, num_hidden), jnp.float32)
    W_hx = 0.0001 * jax.random.normal(k_whx, (num_hidden, input_dim), jnp.float32)
    b_p = jnp.zeros((1, num_classes), jnp.float32)
    W_ph = 0.0001 * jax.random.normal(k_wph, (num_classes, num_hidden), jnp.float32)

    x = jax.random.normal(k_x, (batch_size, seq_length, input_dim), jnp.float32)

    # One-time param prep (transpose + pad), cached across calls.
    params = prepare_rnn_params(W_hx, W_hh, b_h, W_ph, b_p)
    params = jax.tree_util.tree_map(jax.block_until_ready, params)

    p_kernel = jax.block_until_ready(
        vanilla_rnn_forward(x, *params, num_classes=num_classes))
    p_ref = jax.block_until_ready(
        reference_forward(x, W_hx, W_hh, b_h, W_ph, b_p))

    assert p_kernel.shape == (batch_size, num_classes)
    assert jnp.allclose(p_kernel, p_ref, atol=1e-5, rtol=1e-5), (
        "Pallas kernel output mismatch vs. JAX reference")

    print("KERNEL_OK")
</pallas_src>

<mosaic_0001>
module attributes {stable_mosaic.version = 11 : i64} {
  func.func @vanilla_rnn_kernel(%arg0: memref<64x8xf32, #tpu.memory_space<vmem>>, %arg1: memref<8x128xf32, #tpu.memory_space<vmem>>, %arg2: memref<128x128xf32, #tpu.memory_space<vmem>>, %arg3: memref<1x128xf32, #tpu.memory_space<vmem>>, %arg4: memref<128x128xf32, #tpu.memory_space<vmem>>, %arg5: memref<1x128xf32, #tpu.memory_space<vmem>>, %arg6: memref<8x128xf32, #tpu.memory_space<vmem>>) attributes {dimension_semantics = [], scalar_prefetch = 0 : i64, scratch_operands = 0 : i64, tpu.core_type = #tpu.core_type<tc>} {
    %c0 = arith.constant 0 : index
    %c0_0 = arith.constant 0 : index
    %0 = vector.load %arg2[%c0, %c0_0] : memref<128x128xf32, #tpu.memory_space<vmem>>, vector<128x128xf32>
    %c0_1 = arith.constant 0 : index
    %c0_2 = arith.constant 0 : index
    %1 = vector.load %arg0[%c0_1, %c0_2] : memref<64x8xf32, #tpu.memory_space<vmem>>, vector<64x8xf32>
    %c0_3 = arith.constant 0 : index
    %c0_4 = arith.constant 0 : index
    %2 = vector.load %arg1[%c0_3, %c0_4] : memref<8x128xf32, #tpu.memory_space<vmem>>, vector<8x128xf32>
    %cst = arith.constant dense<0.000000e+00> : vector<64x128xf32>
    %3 = tpu.matmul %1, %2, %cst {dimension_numbers = #tpu.dot_dimension_numbers<[1], [0], [0], [1], [0, 0, 1, 1], [], []>} : vector<64x8xf32>, vector<8x128xf32>, vector<64x128xf32> -> vector<64x128xf32>
    %c0_5 = arith.constant 0 : index
    %c0_6 = arith.constant 0 : index
    %4 = vector.load %arg3[%c0_5, %c0_6] : memref<1x128xf32, #tpu.memory_space<vmem>>, vector<1x128xf32>
    %5 = vector.broadcast %4 : vector<1x128xf32> to vector<64x128xf32>
    %6 = arith.addf %3, %5 : vector<64x128xf32>
    %cst_7 = arith.constant 0.000000e+00 : f32
    %7 = vector.broadcast %cst_7 : f32 to vector<8x128xf32>
    %8 = vector.extract_strided_slice %6 {offsets = [0, 0], sizes = [8, 128], strides = [1, 1]} : vector<64x128xf32> to vector<8x128xf32>
    %cst_8 = arith.constant dense<0.000000e+00> : vector<8x128xf32>
    %9 = tpu.matmul %7, %0, %cst_8 {dimension_numbers = #tpu.dot_dimension_numbers<[1], [0], [0], [1], [0, 0, 1, 1], [], []>} : vector<8x128xf32>, vector<128x128xf32>, vector<8x128xf32> -> vector<8x128xf32>
    %10 = arith.addf %8, %9 : vector<8x128xf32>
    %11 = math.tanh %10 : vector<8x128xf32>
    %12 = vector.extract_strided_slice %6 {offsets = [8, 0], sizes = [8, 128], strides = [1, 1]} : vector<64x128xf32> to vector<8x128xf32>
    %cst_9 = arith.constant dense<0.000000e+00> : vector<8x128xf32>
    %13 = tpu.matmul %11, %0, %cst_9 {dimension_numbers = #tpu.dot_dimension_numbers<[1], [0], [0], [1], [0, 0, 1, 1], [], []>} : vector<8x128xf32>, vector<128x128xf32>, vector<8x128xf32> -> vector<8x128xf32>
    %14 = arith.addf %12, %13 : vector<8x128xf32>
    %15 = math.tanh %14 : vector<8x128xf32>
    %16 = vector.extract_strided_slice %6 {offsets = [16, 0], sizes = [8, 128], strides = [1, 1]} : vector<64x128xf32> to vector<8x128xf32>
    %cst_10 = arith.constant dense<0.000000e+00> : vector<8x128xf32>
    %17 = tpu.matmul %15, %0, %cst_10 {dimension_numbers = #tpu.dot_dimension_numbers<[1], [0], [0], [1], [0, 0, 1, 1], [], []>} : vector<8x128xf32>, vector<128x128xf32>, vector<8x128xf32> -> vector<8x128xf32>
    %18 = arith.addf %16, %17 : vector<8x128xf32>
    %19 = math.tanh %18 : vector<8x128xf32>
    %20 = vector.extract_strided_slice %6 {offsets = [24, 0], sizes = [8, 128], strides = [1, 1]} : vector<64x128xf32> to vector<8x128xf32>
    %cst_11 = arith.constant dense<0.000000e+00> : vector<8x128xf32>
    %21 = tpu.matmul %19, %0, %cst_11 {dimension_numbers = #tpu.dot_dimension_numbers<[1], [0], [0], [1], [0, 0, 1, 1], [], []>} : vector<8x128xf32>, vector<128x128xf32>, vector<8x128xf32> -> vector<8x128xf32>
    %22 = arith.addf %20, %21 : vector<8x128xf32>
    %23 = math.tanh %22 : vector<8x128xf32>
    %24 = vector.extract_strided_slice %6 {offsets = [32, 0], sizes = [8, 128], strides = [1, 1]} : vector<64x128xf32> to vector<8x128xf32>
    %cst_12 = arith.constant dense<0.000000e+00> : vector<8x128xf32>
    %25 = tpu.matmul %23, %0, %cst_12 {dimension_numbers = #tpu.dot_dimension_numbers<[1], [0], [0], [1], [0, 0, 1, 1], [], []>} : vector<8x128xf32>, vector<128x128xf32>, vector<8x128xf32> -> vector<8x128xf32>
    %26 = arith.addf %24, %25 : vector<8x128xf32>
    %27 = math.tanh %26 : vector<8x128xf32>
    %28 = vector.extract_strided_slice %6 {offsets = [40, 0], sizes = [8, 128], strides = [1, 1]} : vector<64x128xf32> to vector<8x128xf32>
    %cst_13 = arith.constant dense<0.000000e+00> : vector<8x128xf32>
    %29 = tpu.matmul %27, %0, %cst_13 {dimension_numbers = #tpu.dot_dimension_numbers<[1], [0], [0], [1], [0, 0, 1, 1], [], []>} : vector<8x128xf32>, vector<128x128xf32>, vector<8x128xf32> -> vector<8x128xf32>
    %30 = arith.addf %28, %29 : vector<8x128xf32>
    %31 = math.tanh %30 : vector<8x128xf32>
    %32 = vector.extract_strided_slice %6 {offsets = [48, 0], sizes = [8, 128], strides = [1, 1]} : vector<64x128xf32> to vector<8x128xf32>
    %cst_14 = arith.constant dense<0.000000e+00> : vector<8x128xf32>
    %33 = tpu.matmul %31, %0, %cst_14 {dimension_numbers = #tpu.dot_dimension_numbers<[1], [0], [0], [1], [0, 0, 1, 1], [], []>} : vector<8x128xf32>, vector<128x128xf32>, vector<8x128xf32> -> vector<8x128xf32>
    %34 = arith.addf %32, %33 : vector<8x128xf32>
    %35 = math.tanh %34 : vector<8x128xf32>
    %36 = vector.extract_strided_slice %6 {offsets = [56, 0], sizes = [8, 128], strides = [1, 1]} : vector<64x128xf32> to vector<8x128xf32>
    %cst_15 = arith.constant dense<0.000000e+00> : vector<8x128xf32>
    %37 = tpu.matmul %35, %0, %cst_15 {dimension_numbers = #tpu.dot_dimension_numbers<[1], [0], [0], [1], [0, 0, 1, 1], [], []>} : vector<8x128xf32>, vector<128x128xf32>, vector<8x128xf32> -> vector<8x128xf32>
    %38 = arith.addf %36, %37 : vector<8x128xf32>
    %39 = math.tanh %38 : vector<8x128xf32>
    %c0_16 = arith.constant 0 : index
    %c0_17 = arith.constant 0 : index
    %40 = vector.load %arg4[%c0_16, %c0_17] : memref<128x128xf32, #tpu.memory_space<vmem>>, vector<128x128xf32>
    %cst_18 = arith.constant dense<0.000000e+00> : vector<8x128xf32>
    %41 = tpu.matmul %39, %40, %cst_18 {dimension_numbers = #tpu.dot_dimension_numbers<[1], [0], [0], [1], [0, 0, 1, 1], [], []>} : vector<8x128xf32>, vector<128x128xf32>, vector<8x128xf32> -> vector<8x128xf32>
    %c0_19 = arith.constant 0 : index
    %c0_20 = arith.constant 0 : index
    %42 = vector.load %arg5[%c0_19, %c0_20] : memref<1x128xf32, #tpu.memory_space<vmem>>, vector<1x128xf32>
    %43 = vector.broadcast %42 : vector<1x128xf32> to vector<8x128xf32>
    %44 = arith.addf %41, %43 : vector<8x128xf32>
    %c0_21 = arith.constant 0 : index
    %c0_22 = arith.constant 0 : index
    %45 = vector.load %arg6[%c0_21, %c0_22] : memref<8x128xf32, #tpu.memory_space<vmem>>, vector<8x128xf32>
    tpu.vector_store %arg6[%c0_21, %c0_22], %44 {strides = array<i32>} : memref<8x128xf32, #tpu.memory_space<vmem>>, vector<8x128xf32>,
    return
  }
}

</mosaic_0001>

<bundles_post_ra>
// kernel: vanilla_rnn_forward.1
= control target key start
LH: loop header
LB: loop body
LE: loop exit
PB: predicated region body
PF: predicated region fallthrough
CT: control target
= control target key end

     0   :  { %11 = vsyncpa [#allocation3], 0  ;;  %s1895_s0 = inlined_call_operand.vmem [shape: f32[64,8], index: 0, kind: input, shape index: {}]   ;;  %s1896_s1 = inlined_call_operand.vmem [shape: f32[8,128], index: 1, kind: input, shape index: {}]   ;;  %s1897_s2 = inlined_call_operand.hbm [shape: f32[128,128], index: 2, kind: input, shape index: {}]   ;;  %s1898_s3 = inlined_call_operand.vmem [shape: f32[1,128], index: 3, kind: input, shape index: {}]   ;;  %s1899_s4 = inlined_call_operand.hbm [shape: f32[128,128], index: 4, kind: input, shape index: {}]   ;;  %s1900_s5 = inlined_call_operand.vmem [shape: f32[1,128], index: 5, kind: input, shape index: {}]   ;;  %s1901_s6 = inlined_call_operand.vmem [shape: f32[8,128], index: 6, kind: output, shape index: {}]  }
   0x1   :  { %12 = vsyncpa [#allocation5], 0  ;;  %s1456_s21 = smov [#allocation2]  }
   0x2   :  { %s22_s22 = sshll.u32 %s1456_s21, 4  ;;  %s23_s22 = int_to_ptr.vmem [resolvable:$true] %s22_s22 }
   0x3   :  { %s1420_s23 = scalar_lea.vmem %s23_s22, 2048  ;;  %p1425_p1 = scmp.lt.s32.totalorder %s23_s22, %s23_s22 }
   0x4   :  { %p1421_p0 = scmp.ne.s32.totalorder %s23_s22, %s1420_s23  ;;  %p1426_p2 = scmp.lt.s32.totalorder %s1420_s23, %s1420_s23 }
   0x6   :  { %p1427_p3 = por %p1426_p2, %p1425_p1 }
   0x8   :  { %p1428_p4 = pnand %p1427_p3, %p1421_p0 }
   0xa   :  { %1431 = shalt.err (!%p1428_p4)
}
   0xb   :  { %s1457_s24 = smov 128   ;;  %s1458_s25 = smov 8  }
   0xc   :  { %28 = dma.hbm_to_vmem [thread:$0]  %s1897_s2, 2048, %s23_s22, [#allocation3], %s1457_s24, %s1457_s24, %s1458_s25  }
   0xd   :  { %s1459_s28 = smov [#allocation4]  }
   0xe   :  { %s36_s29 = sshll.u32 %s1459_s28, 4  ;;  %s37_s29 = int_to_ptr.vmem [resolvable:$true] %s36_s29 }
   0xf   :  { %s1440_s30 = scalar_lea.vmem %s37_s29, 2048  ;;  %p1445_p6 = scmp.lt.s32.totalorder %s37_s29, %s37_s29 }
  0x10   :  { %p1441_p5 = scmp.ne.s32.totalorder %s37_s29, %s1440_s30  ;;  %p1446_p7 = scmp.lt.s32.totalorder %s1440_s30, %s1440_s30 }
  0x12   :  { %p1447_p8 = por %p1446_p7, %p1445_p6 }
  0x14   :  { %p1448_p9 = pnand %p1447_p8, %p1441_p5 }
  0x16   :  { %1451 = shalt.err (!%p1448_p9)
}
  0x17   :  { %42 = dma.hbm_to_vmem [thread:$0]  %s1899_s4, 2048, %s37_s29, [#allocation5], %s1457_s24, %s1457_s24, %s1458_s25  }
  0x18   :  { %1452 = dma.done.wait [#allocation3], 2048  }
  0x19   :  { %1453 = vsyncadd [#allocation3], 4294965248 }
  0x1a   :  { %1454 = dma.done.wait [#allocation5], 2048  }
  0x1b   :  { %1455 = vsyncadd [#allocation5], 4294965248  ;;  %v1460_v0 = vmov 0.0   ;;  %vm1461_vm0 = vmmov 0   ;;  %v1506_v1 = vld [vmem:[#allocation2 + $0x78] sm:$0xff]  ;;  %v1508_v2 = vld [vmem:[#allocation2 + $0x70] sm:$0xff] }
  0x1c   :  { %1075 = vmatprep.subr.mxu1 %v1460_v0  ;;  %1107 = vmatprep.mubr.msk.f32.mxu1 %vm1461_vm0, %v1460_v0  ;;  %v1512_v3 = vld [vmem:[#allocation2 + $0x68] sm:$0xff]  ;;  %v1516_v4 = vld [vmem:[#allocation2 + $0x60] sm:$0xff]  ;;  %vm83_vm1 = vcmask 64512   ;;  %v1529_v8 = vld [vmem:[#allocation2 + $0x58] sm:$0xff] }
  0x1d   :  { %1076 = vmatpush3.msra.mxu1 %v1506_v1  ;;  %v75_v5 = vld [vmem:[%s1896_s1] sm:$0xff]  ;;  %v68_v7 = vld [vmem:[%s1895_s0 + $0x8] sm:$0xff]  ;;  %v1534_v9 = vld [vmem:[#allocation2 + $0x50] sm:$0xff] }
  0x1e   :  { %1077 = vmatprep.subr.mxu1 %v1460_v0  ;;  %v67_v6 = vld [vmem:[%s1895_s0] sm:$0xff]  ;;  %1061 = vmatprep.subr.mxu0 %v75_v5  ;;  %v1540_v10 = vld [vmem:[#allocation2 + $0x48] sm:$0xff]  ;;  %v1552_v12 = vld [vmem:[#allocation2 + $0x38] sm:$0xff] }
  0x1f   :  { %1078 = vmatpush3.msra.mxu1 %v1508_v2  ;;  %1062 = vmatpush3.msra.mxu0 %v75_v5  ;;  %v1546_v11 = vld [vmem:[#allocation2 + $0x40] sm:$0xff]  ;;  %v1558_v13 = vld [vmem:[#allocation2 + $0x30] sm:$0xff]  ;;  %v1564_v14 = vld [vmem:[#allocation2 + $0x28] sm:$0xff] }
  0x20   :  { %1079 = vmatprep.subr.mxu1 %v1460_v0  ;;  %1063 = vmatprep.mubr.msk.f32.mxu0 %vm83_vm1, %v67_v6  ;;  %v1570_v15 = vld [vmem:[#allocation2 + $0x20] sm:$0xff]  ;;  %v1576_v16 = vld [vmem:[#allocation2 + $0x18] sm:$0xff]  ;;  %v1582_v17 = vld [vmem:[#allocation2 + $0x10] sm:$0xff] }
  0x21   :  { %1080 = vmatpush3.msra.mxu1 %v1512_v3  ;;  %1064 = vmatmul.mubr.msk.f32.vlgmr.msra.gmra.mxu0 %vm83_vm1, %v68_v7  ;;  %v1588_v18 = vld [vmem:[#allocation2 + $0x8] sm:$0xff]  ;;  %v1594_v19 = vld [vmem:[#allocation2] sm:$0xff]  ;;  %v69_v20 = vld [vmem:[%s1895_s0 + $0x10] sm:$0xff] }
  0x22   :  { %1081 = vmatprep.subr.mxu1 %v1460_v0  ;;  %1110 = vmatprep.subr.mxu0 %v1460_v0  ;;  %v70_v21 = vld [vmem:[%s1895_s0 + $0x18] sm:$0xff]  ;;  %v71_v22 = vld [vmem:[%s1895_s0 + $0x20] sm:$0xff]  ;;  %v72_v23 = vld [vmem:[%s1895_s0 + $0x28] sm:$0xff] }
  0x23   :  { %1082 = vmatpush3.msra.mxu1 %v1516_v4  ;;  %1111 = vmatpush3.msra.mxu0 %v1506_v1  ;;  %v73_v24 = vld [vmem:[%s1895_s0 + $0x30] sm:$0xff]  ;;  %v74_v25 = vld [vmem:[%s1895_s0 + $0x38] sm:$0xff]  ;;  %v1678_v27 = vld [vmem:[%s1898_s3] ss:$0 sm:$0xff] }
  0x24   :  { %1083 = vmatprep.subr.mxu1 %v1460_v0  ;;  %1112 = vmatprep.subr.mxu0 %v1460_v0  ;;  %v801_v5 = vld [vmem:[#allocation4 + $0x60] sm:$0xff]  ;;  %v800_v6 = vld [vmem:[#allocation4 + $0x58] sm:$0xff]  ;;  %v799_v7 = vld [vmem:[#allocation4 + $0x50] sm:$0xff] }
  0x25   :  { %1084 = vmatpush3.msra.mxu1 %v1529_v8  ;;  %1113 = vmatpush3.msra.mxu0 %v1508_v2 }
  0x26   :  { %1085 = vmatprep.subr.mxu1 %v1460_v0  ;;  %1114 = vmatprep.subr.mxu0 %v1460_v0 }
  0x27   :  { %1086 = vmatpush3.msra.mxu1 %v1534_v9  ;;  %1115 = vmatpush3.msra.mxu0 %v1512_v3 }
  0x28   :  { %1087 = vmatprep.subr.mxu1 %v1460_v0  ;;  %1116 = vmatprep.subr.mxu0 %v1460_v0 }
  0x29   :  { %1088 = vmatpush3.msra.mxu1 %v1540_v10  ;;  %1117 = vmatpush3.msra.mxu0 %v1516_v4 }
  0x2a   :  { %1089 = vmatprep.subr.mxu1 %v1460_v0  ;;  %1118 = vmatprep.subr.mxu0 %v1460_v0 }
  0x2b   :  { %1090 = vmatpush3.msra.mxu1 %v1546_v11  ;;  %1119 = vmatpush3.msra.mxu0 %v1529_v8 }
  0x2c   :  { %1091 = vmatprep.subr.mxu1 %v1460_v0  ;;  %1120 = vmatprep.subr.mxu0 %v1460_v0 }
  0x2d   :  { %1092 = vmatpush3.msra.mxu1 %v1552_v12  ;;  %1121 = vmatpush3.msra.mxu0 %v1534_v9 }
  0x2e   :  { %1093 = vmatprep.subr.mxu1 %v1460_v0  ;;  %1122 = vmatprep.subr.mxu0 %v1460_v0 }
  0x2f   :  { %1094 = vmatpush3.msra.mxu1 %v1558_v13  ;;  %1123 = vmatpush3.msra.mxu0 %v1540_v10 }
  0x30   :  { %1095 = vmatprep.subr.mxu1 %v1460_v0  ;;  %1124 = vmatprep.subr.mxu0 %v1460_v0 }
  0x31   :  { %1096 = vmatpush3.msra.mxu1 %v1564_v14  ;;  %1125 = vmatpush3.msra.mxu0 %v1546_v11 }
  0x32   :  { %1097 = vmatprep.subr.mxu1 %v1460_v0  ;;  %1126 = vmatprep.subr.mxu0 %v1460_v0 }
  0x33   :  { %1098 = vmatpush3.msra.mxu1 %v1570_v15  ;;  %1127 = vmatpush3.msra.mxu0 %v1552_v12 }
  0x34   :  { %1099 = vmatprep.subr.mxu1 %v1460_v0  ;;  %1128 = vmatprep.subr.mxu0 %v1460_v0 }
  0x35   :  { %1100 = vmatpush3.msra.mxu1 %v1576_v16  ;;  %1129 = vmatpush3.msra.mxu0 %v1558_v13 }
  0x36   :  { %1101 = vmatprep.subr.mxu1 %v1460_v0  ;;  %1130 = vmatprep.subr.mxu0 %v1460_v0 }
  0x37   :  { %1102 = vmatpush3.msra.mxu1 %v1582_v17  ;;  %1131 = vmatpush3.msra.mxu0 %v1564_v14 }
  0x38   :  { %1103 = vmatprep.subr.mxu1 %v1460_v0  ;;  %1132 = vmatprep.subr.mxu0 %v1460_v0 }
  0x39   :  { %1104 = vmatpush3.msra.mxu1 %v1588_v18  ;;  %1133 = vmatpush3.msra.mxu0 %v1570_v15 }
  0x3a   :  { %1105 = vmatprep.subr.mxu1 %v1460_v0  ;;  %1134 = vmatprep.subr.mxu0 %v1460_v0 }
  0x3b   :  { %1106 = vmatpush3.msra.mxu1 %v1594_v19  ;;  %1135 = vmatpush3.msra.mxu0 %v1576_v16 }
  0x3c   :  { %1108 = vmatmul.mubr.f32.vlgmr.msra.gmra.mxu1 %v1460_v0  ;;  %1145 = vmatprep.subr.mxu1 %v1460_v0 }
  0x3d   :  { %1146 = vmatpush3.msra.mxu1 %v1506_v1  ;;  %1136 = vmatprep.subr.mxu0 %v1460_v0 }
  0x3e   :  { %1147 = vmatprep.subr.mxu1 %v1460_v0  ;;  %1137 = vmatpush3.msra.mxu0 %v1582_v17 }
  0x3f   :  { %1148 = vmatpush3.msra.mxu1 %v1508_v2  ;;  %1138 = vmatprep.subr.mxu0 %v1460_v0 }
  0x40   :  { %1149 = vmatprep.subr.mxu1 %v1460_v0  ;;  %1139 = vmatpush3.msra.mxu0 %v1588_v18 }
  0x41   :  { %1150 = vmatpush3.msra.mxu1 %v1512_v3  ;;  %1140 = vmatprep.subr.mxu0 %v1460_v0 }
  0x42   :  { %1151 = vmatprep.subr.mxu1 %v1460_v0  ;;  %1141 = vmatpush3.msra.mxu0 %v1594_v19 }
  0x43   :  { %1152 = vmatpush3.msra.mxu1 %v1516_v4  ;;  %1177 = vmatprep.mubr.msk.f32.mxu1 %vm1461_vm0, %v1460_v0 }
  0x44   :  { %1153 = vmatprep.subr.mxu1 %v1460_v0  ;;  %1180 = vmatprep.subr.mxu0 %v1460_v0 }
  0x45   :  { %1154 = vmatpush3.msra.mxu1 %v1529_v8  ;;  %1066 = vmatprep.mubr.msk.f32.mxu0 %vm83_vm1, %v69_v20  ;;  %v791_v20 = vld [vmem:[#allocation4 + $0x10] sm:$0xff] }
  0x46   :  { %1155 = vmatprep.subr.mxu1 %v1460_v0  ;;  %1067 = vmatmul.mubr.msk.f32.gmra.mxu0 %vm83_vm1, %v70_v21  ;;  %v790_v21 = vld [vmem:[#allocation4 + $0x8] sm:$0xff] }
  0x47   :  { %1156 = vmatpush3.msra.mxu1 %v1534_v9  ;;  %1069 = vmatprep.mubr.msk.f32.mxu0 %vm83_vm1, %v71_v22  ;;  %v789_v22 = vld [vmem:[#allocation4] sm:$0xff] }
  0x48   :  { %1157 = vmatprep.subr.mxu1 %v1460_v0 }
  0x49   :  { %1158 = vmatpush3.msra.mxu1 %v1540_v10 }
  0x4a   :  { %1159 = vmatprep.subr.mxu1 %v1460_v0  ;;  %1070 = vmatmul.mubr.msk.f32.gmra.mxu0 %vm83_vm1, %v72_v23 }
  0x4b   :  { %1160 = vmatpush3.msra.mxu1 %v1546_v11  ;;  %1072 = vmatprep.mubr.msk.f32.mxu0 %vm83_vm1, %v73_v24 }
  0x4c   :  { %1161 = vmatprep.subr.mxu1 %v1460_v0 }
  0x4d   :  { %1162 = vmatpush3.msra.mxu1 %v1552_v12 }
  0x4e   :  { %1163 = vmatprep.subr.mxu1 %v1460_v0  ;;  %1073 = vmatmul.mubr.msk.f32.gmra.mxu0 %vm83_vm1, %v74_v25 }
  0x4f   :  { %1164 = vmatpush3.msra.mxu1 %v1558_v13  ;;  %1142 = vmatprep.mubr.msk.f32.mxu0 %vm1461_vm0, %v1460_v0 }
  0x50   :  { %1165 = vmatprep.subr.mxu1 %v1460_v0 }
  0x51   :  { %1166 = vmatpush3.msra.mxu1 %v1564_v14 }
  0x52   :  { %1167 = vmatprep.subr.mxu1 %v1460_v0 }
  0x53   :  { %1168 = vmatpush3.msra.mxu1 %v1570_v15 }
  0x54   :  { %1169 = vmatprep.subr.mxu1 %v1460_v0 }
  0x55   :  { %1170 = vmatpush3.msra.mxu1 %v1576_v16 }
  0x56   :  { %1171 = vmatprep.subr.mxu1 %v1460_v0 }
  0x57   :  { %1172 = vmatpush3.msra.mxu1 %v1582_v17 }
  0x58   :  { %1173 = vmatprep.subr.mxu1 %v1460_v0 }
  0x59   :  { %1174 = vmatpush3.msra.mxu1 %v1588_v18 }
  0x5a   :  { %1175 = vmatprep.subr.mxu1 %v1460_v0 }
  0x5b   :  { %1176 = vmatpush3.msra.mxu1 %v1594_v19 }
  0x5c   :  { %1215 = vmatprep.subr.mxu1 %v1460_v0 }
  0xe1   :  { %v1065_v26 = vpop.f32.mrf.mxu0 }
  0xe2   :  { %v180_v40 = vadd.f32 %v1065_v26, %v1678_v27 }
  0xe3   :  { %v174_v28 = vpop.f32.mrf.mxu0 }
  0xe4   :  { %v175_v29 = vadd.f32 %v1678_v27, %v174_v28 }
  0xfc   :  { %v279_v30 = vpop.f32.mrf.mxu1 }
  0xfd   :  { %v283_v31 = vadd.f32 %v279_v30, %v175_v29  ;;  %v898_v29 = vld [vmem:[%s1900_s5] ss:$0 sm:$0xff] }
  0xfe   :  { %v1109_v32 = vpop.f32.mrf.mxu1 }
  0xff   :  { %1396 = vtanh.f32 %v283_v31 }
 0x106   :  { %v1715_v34 = vpop.f32.mrf.mxu0 }
 0x107   :  { %v190_v50 = vadd.f32 %v1715_v34, %v1678_v27 }
 0x108   :  { %v184_v35 = vpop.f32.mrf.mxu0 }
 0x109   :  { %v185_v45 = vadd.f32 %v1678_v27, %v184_v35 }
 0x10a   :  { %v1717_v36 = vpop.f32.mrf.mxu0 }
 0x10b   :  { %v200_v60 = vadd.f32 %v1717_v36, %v1678_v27 }
 0x10c   :  { %v1397_v33 = vpop.eup %1396  ;;  %v1719_v37 = vpop.f32.mrf.mxu0 }
 0x10d   :  { %1143 = vmatmul.mubr.f32.vlgmr.msra.gmra.mxu0 %v1397_v33  ;;  %v195_v55 = vadd.f32 %v1678_v27, %v1719_v37 }
 0x10e   :  { %1181 = vmatpush3.msra.mxu0 %v1506_v1  ;;  %1212 = vmatprep.mubr.msk.f32.mxu0 %vm1461_vm0, %v1460_v0  ;;  %v1721_v38 = vpop.f32.mrf.mxu0 }
 0x10f   :  { %1182 = vmatprep.subr.mxu0 %v1460_v0  ;;  %v210_v23 = vadd.f32 %v1721_v38, %v1678_v27 }
 0x110   :  { %1183 = vmatpush3.msra.mxu0 %v1508_v2  ;;  %v1723_v39 = vpop.f32.mrf.mxu0 }
 0x111   :  { %1184 = vmatprep.subr.mxu0 %v1460_v0 }
 0x112   :  { %1185 = vmatpush3.msra.mxu0 %v1512_v3 }
 0x113   :  { %1186 = vmatprep.subr.mxu0 %v1460_v0 }
 0x114   :  { %1187 = vmatpush3.msra.mxu0 %v1516_v4 }
 0x115   :  { %1188 = vmatprep.subr.mxu0 %v1460_v0 }
 0x116   :  { %1189 = vmatpush3.msra.mxu0 %v1529_v8 }
 0x117   :  { %1190 = vmatprep.subr.mxu0 %v1460_v0 }
 0x118   :  { %1191 = vmatpush3.msra.mxu0 %v1534_v9 }
 0x119   :  { %1192 = vmatprep.subr.mxu0 %v1460_v0 }
 0x11a   :  { %1193 = vmatpush3.msra.mxu0 %v1540_v10 }
 0x11b   :  { %1194 = vmatprep.subr.mxu0 %v1460_v0 }
 0x11c   :  { %1195 = vmatpush3.msra.mxu0 %v1546_v11 }
 0x11d   :  { %1196 = vmatprep.subr.mxu0 %v1460_v0 }
 0x11e   :  { %1197 = vmatpush3.msra.mxu0 %v1552_v12 }
 0x11f   :  { %1198 = vmatprep.subr.mxu0 %v1460_v0 }
 0x120   :  { %1199 = vmatpush3.msra.mxu0 %v1558_v13 }
 0x121   :  { %1200 = vmatprep.subr.mxu0 %v1460_v0 }
 0x122   :  { %1201 = vmatpush3.msra.mxu0 %v1564_v14 }
 0x123   :  { %1202 = vmatprep.subr.mxu0 %v1460_v0 }
 0x124   :  { %1203 = vmatpush3.msra.mxu0 %v1570_v15 }
 0x125   :  { %1204 = vmatprep.subr.mxu0 %v1460_v0 }
 0x126   :  { %1205 = vmatpush3.msra.mxu0 %v1576_v16 }
 0x127   :  { %1206 = vmatprep.subr.mxu0 %v1460_v0 }
 0x128   :  { %1207 = vmatpush3.msra.mxu0 %v1582_v17 }
 0x129   :  { %1208 = vmatprep.subr.mxu0 %v1460_v0 }
 0x12a   :  { %1209 = vmatpush3.msra.mxu0 %v1588_v18 }
 0x12b   :  { %1210 = vmatprep.subr.mxu0 %v1460_v0 }
 0x12c   :  { %1211 = vmatpush3.msra.mxu0 %v1594_v19 }
 0x12d   :  { %1250 = vmatprep.subr.mxu0 %v1460_v0 }
 0x1cd   :  { %v351_v41 = vpop.f32.mrf.mxu0 }
 0x1ce   :  { %v355_v42 = vadd.f32 %v351_v41, %v180_v40 }
 0x1cf   :  { %v1144_v43 = vpop.f32.mrf.mxu0 }
 0x1d0   :  { %1398 = vtanh.f32 %v355_v42 }
 0x1dd   :  { %v1399_v44 = vpop.eup %1398 }
 0x1de   :  { %1178 = vmatmul.mubr.f32.vlgmr.msra.gmra.mxu1 %v1399_v44 }
 0x1df   :  { %1216 = vmatpush3.msra.mxu1 %v1506_v1  ;;  %1247 = vmatprep.mubr.msk.f32.mxu1 %vm1461_vm0, %v1460_v0 }
 0x1e0   :  { %1217 = vmatprep.subr.mxu1 %v1460_v0 }
 0x1e1   :  { %1218 = vmatpush3.msra.mxu1 %v1508_v2 }
 0x1e2   :  { %1219 = vmatprep.subr.mxu1 %v1460_v0 }
 0x1e3   :  { %1220 = vmatpush3.msra.mxu1 %v1512_v3 }
 0x1e4   :  { %1221 = vmatprep.subr.mxu1 %v1460_v0 }
 0x1e5   :  { %1222 = vmatpush3.msra.mxu1 %v1516_v4 }
 0x1e6   :  { %1223 = vmatprep.subr.mxu1 %v1460_v0 }
 0x1e7   :  { %1224 = vmatpush3.msra.mxu1 %v1529_v8 }
 0x1e8   :  { %1225 = vmatprep.subr.mxu1 %v1460_v0 }
 0x1e9   :  { %1226 = vmatpush3.msra.mxu1 %v1534_v9 }
 0x1ea   :  { %1227 = vmatprep.subr.mxu1 %v1460_v0 }
 0x1eb   :  { %1228 = vmatpush3.msra.mxu1 %v1540_v10 }
 0x1ec   :  { %1229 = vmatprep.subr.mxu1 %v1460_v0 }
 0x1ed   :  { %1230 = vmatpush3.msra.mxu1 %v1546_v11 }
 0x1ee   :  { %1231 = vmatprep.subr.mxu1 %v1460_v0 }
 0x1ef   :  { %1232 = vmatpush3.msra.mxu1 %v1552_v12 }
 0x1f0   :  { %1233 = vmatprep.subr.mxu1 %v1460_v0 }
 0x1f1   :  { %1234 = vmatpush3.msra.mxu1 %v1558_v13 }
 0x1f2   :  { %1235 = vmatprep.subr.mxu1 %v1460_v0 }
 0x1f3   :  { %1236 = vmatpush3.msra.mxu1 %v1564_v14 }
 0x1f4   :  { %1237 = vmatprep.subr.mxu1 %v1460_v0 }
 0x1f5   :  { %1238 = vmatpush3.msra.mxu1 %v1570_v15 }
 0x1f6   :  { %1239 = vmatprep.subr.mxu1 %v1460_v0 }
 0x1f7   :  { %1240 = vmatpush3.msra.mxu1 %v1576_v16 }
 0x1f8   :  { %1241 = vmatprep.subr.mxu1 %v1460_v0 }
 0x1f9   :  { %1242 = vmatpush3.msra.mxu1 %v1582_v17 }
 0x1fa   :  { %1243 = vmatprep.subr.mxu1 %v1460_v0 }
 0x1fb   :  { %1244 = vmatpush3.msra.mxu1 %v1588_v18 }
 0x1fc   :  { %1245 = vmatprep.subr.mxu1 %v1460_v0 }
 0x1fd   :  { %1246 = vmatpush3.msra.mxu1 %v1594_v19 }
 0x1fe   :  { %1285 = vmatprep.subr.mxu1 %v1460_v0 }
 0x29e   :  { %v423_v46 = vpop.f32.mrf.mxu1 }
 0x29f   :  { %v427_v47 = vadd.f32 %v423_v46, %v185_v45 }
 0x2a0   :  { %v1179_v48 = vpop.f32.mrf.mxu1 }
 0x2a1   :  { %1400 = vtanh.f32 %v427_v47 }
 0x2ae   :  { %v1401_v49 = vpop.eup %1400 }
 0x2af   :  { %1213 = vmatmul.mubr.f32.vlgmr.msra.gmra.mxu0 %v1401_v49 }
 0x2b0   :  { %1251 = vmatpush3.msra.mxu0 %v1506_v1  ;;  %1282 = vmatprep.mubr.msk.f32.mxu0 %vm1461_vm0, %v1460_v0 }
 0x2b1   :  { %1252 = vmatprep.subr.mxu0 %v1460_v0 }
 0x2b2   :  { %1253 = vmatpush3.msra.mxu0 %v1508_v2 }
 0x2b3   :  { %1254 = vmatprep.subr.mxu0 %v1460_v0 }
 0x2b4   :  { %1255 = vmatpush3.msra.mxu0 %v1512_v3 }
 0x2b5   :  { %1256 = vmatprep.subr.mxu0 %v1460_v0 }
 0x2b6   :  { %1257 = vmatpush3.msra.mxu0 %v1516_v4 }
 0x2b7   :  { %1258 = vmatprep.subr.mxu0 %v1460_v0 }
 0x2b8   :  { %1259 = vmatpush3.msra.mxu0 %v1529_v8 }
 0x2b9   :  { %1260 = vmatprep.subr.mxu0 %v1460_v0 }
 0x2ba   :  { %1261 = vmatpush3.msra.mxu0 %v1534_v9 }
 0x2bb   :  { %1262 = vmatprep.subr.mxu0 %v1460_v0 }
 0x2bc   :  { %1263 = vmatpush3.msra.mxu0 %v1540_v10 }
 0x2bd   :  { %1264 = vmatprep.subr.mxu0 %v1460_v0 }
 0x2be   :  { %1265 = vmatpush3.msra.mxu0 %v1546_v11 }
 0x2bf   :  { %1266 = vmatprep.subr.mxu0 %v1460_v0 }
 0x2c0   :  { %1267 = vmatpush3.msra.mxu0 %v1552_v12 }
 0x2c1   :  { %1268 = vmatprep.subr.mxu0 %v1460_v0 }
 0x2c2   :  { %1269 = vmatpush3.msra.mxu0 %v1558_v13 }
 0x2c3   :  { %1270 = vmatprep.subr.mxu0 %v1460_v0 }
 0x2c4   :  { %1271 = vmatpush3.msra.mxu0 %v1564_v14 }
 0x2c5   :  { %1272 = vmatprep.subr.mxu0 %v1460_v0 }
 0x2c6   :  { %1273 = vmatpush3.msra.mxu0 %v1570_v15 }
 0x2c7   :  { %1274 = vmatprep.subr.mxu0 %v1460_v0 }
 0x2c8   :  { %1275 = vmatpush3.msra.mxu0 %v1576_v16 }
 0x2c9   :  { %1276 = vmatprep.subr.mxu0 %v1460_v0 }
 0x2ca   :  { %1277 = vmatpush3.msra.mxu0 %v1582_v17 }
 0x2cb   :  { %1278 = vmatprep.subr.mxu0 %v1460_v0 }
 0x2cc   :  { %1279 = vmatpush3.msra.mxu0 %v1588_v18 }
 0x2cd   :  { %1280 = vmatprep.subr.mxu0 %v1460_v0 }
 0x2ce   :  { %1281 = vmatpush3.msra.mxu0 %v1594_v19 }
 0x2cf   :  { %1320 = vmatprep.subr.mxu0 %v1460_v0 }
 0x36f   :  { %v495_v51 = vpop.f32.mrf.mxu0 }
 0x370   :  { %v499_v52 = vadd.f32 %v495_v51, %v190_v50 }
 0x371   :  { %v1214_v53 = vpop.f32.mrf.mxu0 }
 0x372   :  { %1402 = vtanh.f32 %v499_v52 }
 0x37f   :  { %v1403_v54 = vpop.eup %1402 }
 0x380   :  { %1248 = vmatmul.mubr.f32.vlgmr.msra.gmra.mxu1 %v1403_v54 }
 0x381   :  { %1286 = vmatpush3.msra.mxu1 %v1506_v1  ;;  %1317 = vmatprep.mubr.msk.f32.mxu1 %vm1461_vm0, %v1460_v0 }
 0x382   :  { %1287 = vmatprep.subr.mxu1 %v1460_v0 }
 0x383   :  { %1288 = vmatpush3.msra.mxu1 %v1508_v2 }
 0x384   :  { %1289 = vmatprep.subr.mxu1 %v1460_v0 }
 0x385   :  { %1290 = vmatpush3.msra.mxu1 %v1512_v3 }
 0x386   :  { %1291 = vmatprep.subr.mxu1 %v1460_v0 }
 0x387   :  { %1292 = vmatpush3.msra.mxu1 %v1516_v4 }
 0x388   :  { %1293 = vmatprep.subr.mxu1 %v1460_v0 }
 0x389   :  { %1294 = vmatpush3.msra.mxu1 %v1529_v8 }
 0x38a   :  { %1295 = vmatprep.subr.mxu1 %v1460_v0 }
 0x38b   :  { %1296 = vmatpush3.msra.mxu1 %v1534_v9 }
 0x38c   :  { %1297 = vmatprep.subr.mxu1 %v1460_v0 }
 0x38d   :  { %1298 = vmatpush3.msra.mxu1 %v1540_v10 }
 0x38e   :  { %1299 = vmatprep.subr.mxu1 %v1460_v0 }
 0x38f   :  { %1300 = vmatpush3.msra.mxu1 %v1546_v11 }
 0x390   :  { %1301 = vmatprep.subr.mxu1 %v1460_v0 }
 0x391   :  { %1302 = vmatpush3.msra.mxu1 %v1552_v12 }
 0x392   :  { %1303 = vmatprep.subr.mxu1 %v1460_v0 }
 0x393   :  { %1304 = vmatpush3.msra.mxu1 %v1558_v13 }
 0x394   :  { %1305 = vmatprep.subr.mxu1 %v1460_v0 }
 0x395   :  { %1306 = vmatpush3.msra.mxu1 %v1564_v14 }
 0x396   :  { %1307 = vmatprep.subr.mxu1 %v1460_v0 }
 0x397   :  { %1308 = vmatpush3.msra.mxu1 %v1570_v15 }
 0x398   :  { %1309 = vmatprep.subr.mxu1 %v1460_v0 }
 0x399   :  { %1310 = vmatpush3.msra.mxu1 %v1576_v16 }
 0x39a   :  { %1311 = vmatprep.subr.mxu1 %v1460_v0 }
 0x39b   :  { %1312 = vmatpush3.msra.mxu1 %v1582_v17 }
 0x39c   :  { %1313 = vmatprep.subr.mxu1 %v1460_v0 }
 0x39d   :  { %1314 = vmatpush3.msra.mxu1 %v1588_v18 }
 0x39e   :  { %1315 = vmatprep.subr.mxu1 %v1460_v0 }
 0x39f   :  { %1316 = vmatpush3.msra.mxu1 %v1594_v19 }
 0x3a0   :  { %1355 = vmatprep.subr.mxu1 %v1460_v0 }
 0x440   :  { %v567_v56 = vpop.f32.mrf.mxu1 }
 0x441   :  { %v571_v57 = vadd.f32 %v567_v56, %v195_v55 }
 0x442   :  { %v1249_v58 = vpop.f32.mrf.mxu1 }
 0x443   :  { %1404 = vtanh.f32 %v571_v57 }
 0x450   :  { %v1405_v59 = vpop.eup %1404 }
 0x451   :  { %1283 = vmatmul.mubr.f32.vlgmr.msra.gmra.mxu0 %v1405_v59 }
 0x452   :  { %1321 = vmatpush3.msra.mxu0 %v1506_v1  ;;  %1352 = vmatprep.mubr.msk.f32.mxu0 %vm1461_vm0, %v1460_v0 }
 0x453   :  { %1322 = vmatprep.subr.mxu0 %v1460_v0 }
 0x454   :  { %1323 = vmatpush3.msra.mxu0 %v1508_v2  ;;  %v804_v2 = vld [vmem:[#allocation4 + $0x78] sm:$0xff] }
 0x455   :  { %1324 = vmatprep.subr.mxu0 %v1460_v0 }
 0x456   :  { %1325 = vmatpush3.msra.mxu0 %v1512_v3  ;;  %v803_v3 = vld [vmem:[#allocation4 + $0x70] sm:$0xff] }
 0x457   :  { %1326 = vmatprep.subr.mxu0 %v1460_v0 }
 0x458   :  { %1327 = vmatpush3.msra.mxu0 %v1516_v4  ;;  %v802_v4 = vld [vmem:[#allocation4 + $0x68] sm:$0xff] }
 0x459   :  { %1328 = vmatprep.subr.mxu0 %v1460_v0 }
 0x45a   :  { %1329 = vmatpush3.msra.mxu0 %v1529_v8  ;;  %v798_v8 = vld [vmem:[#allocation4 + $0x48] sm:$0xff] }
 0x45b   :  { %1330 = vmatprep.subr.mxu0 %v1460_v0 }
 0x45c   :  { %1331 = vmatpush3.msra.mxu0 %v1534_v9  ;;  %v205_v9 = vadd.f32 %v1678_v27, %v1723_v39 }
 0x45d   :  { %1332 = vmatprep.subr.mxu0 %v1460_v0 }
 0x45e   :  { %1333 = vmatpush3.msra.mxu0 %v1540_v10 }
 0x45f   :  { %1334 = vmatprep.subr.mxu0 %v1460_v0 }
 0x460   :  { %1335 = vmatpush3.msra.mxu0 %v1546_v11 }
 0x461   :  { %1336 = vmatprep.subr.mxu0 %v1460_v0 }
 0x462   :  { %1337 = vmatpush3.msra.mxu0 %v1552_v12 }
 0x463   :  { %1338 = vmatprep.subr.mxu0 %v1460_v0 }
 0x464   :  { %1339 = vmatpush3.msra.mxu0 %v1558_v13 }
 0x465   :  { %1340 = vmatprep.subr.mxu0 %v1460_v0 }
 0x466   :  { %1341 = vmatpush3.msra.mxu0 %v1564_v14  ;;  %v797_v14 = vld [vmem:[#allocation4 + $0x40] sm:$0xff] }
 0x467   :  { %1342 = vmatprep.subr.mxu0 %v1460_v0 }
 0x468   :  { %1343 = vmatpush3.msra.mxu0 %v1570_v15  ;;  %v796_v15 = vld [vmem:[#allocation4 + $0x38] sm:$0xff] }
 0x469   :  { %1344 = vmatprep.subr.mxu0 %v1460_v0 }
 0x46a   :  { %1345 = vmatpush3.msra.mxu0 %v1576_v16  ;;  %v795_v16 = vld [vmem:[#allocation4 + $0x30] sm:$0xff] }
 0x46b   :  { %1346 = vmatprep.subr.mxu0 %v1460_v0 }
 0x46c   :  { %1347 = vmatpush3.msra.mxu0 %v1582_v17  ;;  %v794_v17 = vld [vmem:[#allocation4 + $0x28] sm:$0xff] }
 0x46d   :  { %1348 = vmatprep.subr.mxu0 %v1460_v0 }
 0x46e   :  { %1349 = vmatpush3.msra.mxu0 %v1588_v18  ;;  %v793_v18 = vld [vmem:[#allocation4 + $0x20] sm:$0xff] }
 0x46f   :  { %1350 = vmatprep.subr.mxu0 %v1460_v0 }
 0x470   :  { %1351 = vmatpush3.msra.mxu0 %v1594_v19  ;;  %v792_v19 = vld [vmem:[#allocation4 + $0x18] sm:$0xff] }
 0x511   :  { %v639_v61 = vpop.f32.mrf.mxu0 }
 0x512   :  { %v643_v62 = vadd.f32 %v639_v61, %v200_v60 }
 0x513   :  { %v1284_v63 = vpop.f32.mrf.mxu0 }
 0x514   :  { %1406 = vtanh.f32 %v643_v62 }
 0x521   :  { %v1407_v1 = vpop.eup %1406 }
 0x522   :  { %1318 = vmatmul.mubr.f32.vlgmr.msra.gmra.mxu1 %v1407_v1 }
 0x523   :  { %1387 = vmatprep.mubr.msk.f32.mxu1 %vm1461_vm0, %v1460_v0  ;;  %1356 = vmatpush3.msra.mxu1 %v804_v2 }
 0x524   :  { %1357 = vmatprep.subr.mxu1 %v1460_v0 }
 0x525   :  { %1358 = vmatpush3.msra.mxu1 %v803_v3 }
 0x526   :  { %1359 = vmatprep.subr.mxu1 %v1460_v0 }
 0x527   :  { %1360 = vmatpush3.msra.mxu1 %v802_v4 }
 0x528   :  { %1361 = vmatprep.subr.mxu1 %v1460_v0 }
 0x529   :  { %1362 = vmatpush3.msra.mxu1 %v801_v5 }
 0x52a   :  { %1363 = vmatprep.subr.mxu1 %v1460_v0 }
 0x52b   :  { %1364 = vmatpush3.msra.mxu1 %v800_v6 }
 0x52c   :  { %1365 = vmatprep.subr.mxu1 %v1460_v0 }
 0x52d   :  { %1366 = vmatpush3.msra.mxu1 %v799_v7 }
 0x52e   :  { %1367 = vmatprep.subr.mxu1 %v1460_v0 }
 0x52f   :  { %1368 = vmatpush3.msra.mxu1 %v798_v8 }
 0x530   :  { %1369 = vmatprep.subr.mxu1 %v1460_v0 }
 0x531   :  { %1370 = vmatpush3.msra.mxu1 %v797_v14 }
 0x532   :  { %1371 = vmatprep.subr.mxu1 %v1460_v0 }
 0x533   :  { %1372 = vmatpush3.msra.mxu1 %v796_v15 }
 0x534   :  { %1373 = vmatprep.subr.mxu1 %v1460_v0 }
 0x535   :  { %1374 = vmatpush3.msra.mxu1 %v795_v16 }
 0x536   :  { %1375 = vmatprep.subr.mxu1 %v1460_v0 }
 0x537   :  { %1376 = vmatpush3.msra.mxu1 %v794_v17 }
 0x538   :  { %1377 = vmatprep.subr.mxu1 %v1460_v0 }
 0x539   :  { %1378 = vmatpush3.msra.mxu1 %v793_v18 }
 0x53a   :  { %1379 = vmatprep.subr.mxu1 %v1460_v0 }
 0x53b   :  { %1380 = vmatpush3.msra.mxu1 %v792_v19 }
 0x53c   :  { %1381 = vmatprep.subr.mxu1 %v1460_v0 }
 0x53d   :  { %1382 = vmatpush3.msra.mxu1 %v791_v20 }
 0x53e   :  { %1383 = vmatprep.subr.mxu1 %v1460_v0 }
 0x53f   :  { %1384 = vmatpush3.msra.mxu1 %v790_v21 }
 0x540   :  { %1385 = vmatprep.subr.mxu1 %v1460_v0 }
 0x541   :  { %1386 = vmatpush3.msra.mxu1 %v789_v22 }
 0x5e2   :  { %v711_v10 = vpop.f32.mrf.mxu1 }
 0x5e3   :  { %v715_v11 = vadd.f32 %v711_v10, %v205_v9 }
 0x5e4   :  { %v1319_v12 = vpop.f32.mrf.mxu1 }
 0x5e5   :  { %1408 = vtanh.f32 %v715_v11 }
 0x5f2   :  { %v1409_v13 = vpop.eup %1408 }
 0x5f3   :  { %1353 = vmatmul.mubr.f32.vlgmr.msra.gmra.mxu0 %v1409_v13 }
 0x6b3   :  { %v783_v24 = vpop.f32.mrf.mxu0 }
 0x6b4   :  { %v787_v25 = vadd.f32 %v783_v24, %v210_v23 }
 0x6b5   :  { %v1354_v26 = vpop.f32.mrf.mxu0 }
 0x6b6   :  { %1410 = vtanh.f32 %v787_v25 }
 0x6c3   :  { %v1411_v28 = vpop.eup %1410 }
 0x6c4   :  { %1388 = vmatmul.mubr.f32.vlgmr.msra.gmra.mxu1 %v1411_v28 }
 0x784   :  { %v878_v30 = vpop.f32.mrf.mxu1 }
 0x785   :  { %v879_v31 = vadd.f32 %v898_v29, %v878_v30 }
 0x786   :  { %v1389_v32 = vpop.f32.mrf.mxu1 }
 0x787   :  { %882 = vst [vmem:[%s1901_s6] sm:$0xff] %v879_v31 }
 0x788   :  { %887 = vsyncpa [#allocation3], 1 }
 0x789   :  { %888 = vsyncpa [#allocation5], 1 }

</bundles_post_ra>
